<compile_context>
chip_gen: v7x
topology: tpu7x:2x2x1
jax: 0.10.0
libtpu: 0.0.40
codegen_flags: <defaults>
</compile_context>

<pallas_src>
import functools

import numpy as np
import jax
import jax.numpy as jnp
from jax.experimental import pallas as pl
from jax.experimental.pallas import tpu as pltpu


def _dqn_vector_kernel(x_ref, w1_ref, b1_ref, w2_ref, b2_ref, w3_ref, b3_ref,
                       out_ref, *, num_actions):
    x = x_ref[...]                                                # (TB, D) f32
    # Layer 1: Linear(D, 128) + Tanh  (f32 accumulation on the MXU)
    h1 = jnp.tanh(
        jnp.dot(x, w1_ref[...], preferred_element_type=jnp.float32)
        + b1_ref[...])                                            # (TB, 128)
    # Layer 2: Linear(128, 64) + Tanh
    h2 = jnp.tanh(
        jnp.dot(h1, w2_ref[...], preferred_element_type=jnp.float32)
        + b2_ref[...])                                            # (TB, 64)
    # Layer 3: Linear(64, A_pad); padded columns are zero weights / zero bias.
    logits = (jnp.dot(h2, w3_ref[...], preferred_element_type=jnp.float32)
              + b3_ref[...])                                      # (TB, A_pad)
    # Drop the padded action lanes BEFORE the softmax so they take no
    # probability mass and never reach HBM.
    logits = logits[:, :num_actions]                              # (TB, A)
    # Numerically stable softmax with exact normalization.
    m = jnp.max(logits, axis=-1, keepdims=True)
    e = jnp.exp(logits - m)
    denom = jnp.sum(e, axis=-1, keepdims=True)
    out_ref[...] = (e / denom).astype(out_ref.dtype)              # (TB, A)


def dqn_vector_forward(obs, params, *, block_batch=2048, out_dtype=jnp.float32):
    """obs: (batch, input_dim) float32; params: dict of f32 weights/biases.

    Returns softmax(Q) of shape (batch, action_shape) in `out_dtype`.
    """
    obs = jnp.asarray(obs, jnp.float32)
    batch, input_dim = obs.shape
    w1, b1 = params["w1"], params["b1"]
    w2, b2 = params["w2"], params["b2"]
    w3, b3 = params["w3"], params["b3"]
    action_shape = w3.shape[1]

    # ---- pad the N dim of the last matmul to a lane multiple (zeros) ----
    a_pad = 128 * pl.cdiv(action_shape, 128)
    if a_pad != action_shape:
        w3p = jnp.zeros((w3.shape[0], a_pad), jnp.float32)
        w3p = w3p.at[:, :action_shape].set(w3.astype(jnp.float32))
        b3p = jnp.zeros((1, a_pad), jnp.float32)
        b3p = b3p.at[:, :action_shape].set(b3.reshape(1, -1).astype(jnp.float32))
    else:
        w3p = w3.astype(jnp.float32)
        b3p = b3.reshape(1, -1).astype(jnp.float32)

    # ---- batch tile: multiple of the sublane granule, pad batch only if needed ----
    granule = 8 if np.dtype(out_dtype).itemsize >= 4 else 16   # bf16 needs 16 rows
    tb = max(granule, min((int(block_batch) // granule) * granule,
                          granule * pl.cdiv(batch, granule)))
    n_blocks = pl.cdiv(batch, tb)
    batch_pad = tb * n_blocks
    obs_in = obs if batch_pad == batch else jnp.pad(
        obs, ((0, batch_pad - batch), (0, 0)))

    kernel = functools.partial(_dqn_vector_kernel, num_actions=action_shape)
    const = lambda i: (0, 0)   # weights/biases resident in VMEM (DMA'd once)

    out = pl.pallas_call(
        kernel,
        out_shape=jax.ShapeDtypeStruct((batch_pad, action_shape), out_dtype),
        grid_spec=pltpu.PrefetchScalarGridSpec(
            num_scalar_prefetch=0,
            grid=(n_blocks,),
            in_specs=[
                pl.BlockSpec((tb, input_dim), lambda i: (i, 0)),   # obs tile
                pl.BlockSpec((input_dim, 128), const),             # w1
                pl.BlockSpec((1, 128), const),                     # b1
                pl.BlockSpec((128, 64), const),                    # w2
                pl.BlockSpec((1, 64), const),                      # b2
                pl.BlockSpec((64, a_pad), const),                  # w3 (lane-padded)
                pl.BlockSpec((1, a_pad), const),                   # b3 (lane-padded)
            ],
            out_specs=pl.BlockSpec((tb, action_shape), lambda i: (i, 0)),
        ),
        compiler_params=pltpu.CompilerParams(
            dimension_semantics=("parallel",)),
    )(obs_in,
      w1.astype(jnp.float32), b1.reshape(1, -1).astype(jnp.float32),
      w2.astype(jnp.float32), b2.reshape(1, -1).astype(jnp.float32),
      w3p, b3p)

    return out if batch_pad == batch else out[:batch]


def init_params(input_dim, action_shape, key):
    """Deterministic synthetic parameters (same shapes as the torch module)."""
    k1, k2, k3, k4, k5, k6 = jax.random.split(key, 6)
    s1 = 1.0 / jnp.sqrt(input_dim)
    s2 = 1.0 / jnp.sqrt(128.0)
    s3 = 1.0 / jnp.sqrt(64.0)
    return {
        # stored transposed relative to torch: (in_features, out_features)
        "w1": jax.random.uniform(k1, (input_dim, 128), jnp.float32, -s1, s1),
        "b1": jax.random.uniform(k2, (1, 128), jnp.float32, -s1, s1),
        "w2": jax.random.uniform(k3, (128, 64), jnp.float32, -s2, s2),
        "b2": jax.random.uniform(k4, (1, 64), jnp.float32, -s2, s2),
        "w3": jax.random.uniform(k5, (64, action_shape), jnp.float32, -s3, s3),
        "b3": jax.random.uniform(k6, (1, action_shape), jnp.float32, -s3, s3),
    }


def _reference(obs, params):
    h1 = jnp.tanh(obs @ params["w1"] + params["b1"])
    h2 = jnp.tanh(h1 @ params["w2"] + params["b2"])
    logits = h2 @ params["w3"] + params["b3"]
    return jax.nn.softmax(logits, axis=-1)


if __name__ == "__main__":
    key = jax.random.PRNGKey(0)
    k_obs, k_obs2, k_params = jax.random.split(key, 3)

    batch = 2
    input_dim = 16
    action_shape = 6
    params = init_params(input_dim, action_shape, k_params)

    # --- small f32 run (tiny batch; single grid step) ---
    obs = jax.random.normal(k_obs, (batch, input_dim), dtype=jnp.float32)
    q = jax.block_until_ready(dqn_vector_forward(obs, params))
    ref = _reference(obs, params)
    assert q.shape == (batch, action_shape)
    assert q.dtype == jnp.float32
    # Tolerance covers TPU default matmul precision differences vs XLA reference.
    assert jnp.allclose(q, ref, atol=2e-2, rtol=2e-2), "mismatch vs reference"
    # Exact softmax normalization -> rows sum to 1 within f32 rounding.
    assert jnp.allclose(jnp.sum(q, axis=-1), 1.0, atol=1e-3)

    # --- larger run: non-multiple batch, 3-step tiled grid, bf16 output ---
    batch2 = 300
    obs2 = jax.random.normal(k_obs2, (batch2, input_dim), dtype=jnp.float32)
    q2 = jax.block_until_ready(
        dqn_vector_forward(obs2, params, block_batch=128,
                           out_dtype=jnp.bfloat16))
    ref2 = _reference(obs2, params)
    assert q2.shape == (batch2, action_shape)
    assert q2.dtype == jnp.bfloat16
    q2f = q2.astype(jnp.float32)
    assert bool(jnp.all(jnp.isfinite(q2f)))
    # bf16 output quantization: each probability within ~2^-9 relative.
    assert jnp.allclose(q2f, ref2, atol=2e-2, rtol=2e-2)
    assert jnp.allclose(jnp.sum(q2f, axis=-1), 1.0, atol=1e-2)

    print("KERNEL_OK")
</pallas_src>

<mosaic_0001>
module attributes {stable_mosaic.version = 11 : i64} {
  func.func @_dqn_vector_kernel(%arg0: i32, %arg1: memref<8x16xf32, #tpu.memory_space<vmem>>, %arg2: memref<16x128xf32, #tpu.memory_space<vmem>>, %arg3: memref<1x128xf32, #tpu.memory_space<vmem>>, %arg4: memref<128x64xf32, #tpu.memory_space<vmem>>, %arg5: memref<1x64xf32, #tpu.memory_space<vmem>>, %arg6: memref<64x128xf32, #tpu.memory_space<vmem>>, %arg7: memref<1x128xf32, #tpu.memory_space<vmem>>, %arg8: memref<8x6xf32, #tpu.memory_space<vmem>>) attributes {dimension_semantics = [#tpu.dimension_semantics<parallel>], iteration_bounds = array<i64: 1>, scalar_prefetch = 0 : i64, scratch_operands = 0 : i64, tpu.core_type = #tpu.core_type<tc>, window_params = [{transform_indices = @transform_0, window_bounds = array<i64: 8, 16>}, {pipeline_mode = #tpu.pipeline_mode<synchronous>, transform_indices = @transform_1, window_bounds = array<i64: 16, 128>}, {pipeline_mode = #tpu.pipeline_mode<synchronous>, transform_indices = @transform_2, window_bounds = array<i64: 1, 128>}, {pipeline_mode = #tpu.pipeline_mode<synchronous>, transform_indices = @transform_3, window_bounds = array<i64: 128, 64>}, {pipeline_mode = #tpu.pipeline_mode<synchronous>, transform_indices = @transform_4, window_bounds = array<i64: 1, 64>}, {pipeline_mode = #tpu.pipeline_mode<synchronous>, transform_indices = @transform_5, window_bounds = array<i64: 64, 128>}, {pipeline_mode = #tpu.pipeline_mode<synchronous>, transform_indices = @transform_6, window_bounds = array<i64: 1, 128>}, {transform_indices = @transform_7, window_bounds = array<i64: 8, 6>}]} {
    %c0 = arith.constant 0 : index
    %c0_0 = arith.constant 0 : index
    %0 = vector.load %arg1[%c0, %c0_0] : memref<8x16xf32, #tpu.memory_space<vmem>>, vector<8x16xf32>
    %c0_1 = arith.constant 0 : index
    %c0_2 = arith.constant 0 : index
    %1 = vector.load %arg2[%c0_1, %c0_2] : memref<16x128xf32, #tpu.memory_space<vmem>>, vector<16x128xf32>
    %cst = arith.constant dense<0.000000e+00> : vector<8x128xf32>
    %2 = tpu.matmul %0, %1, %cst {dimension_numbers = #tpu.dot_dimension_numbers<[1], [0], [0], [1], [0, 0, 1, 1], [], []>} : vector<8x16xf32>, vector<16x128xf32>, vector<8x128xf32> -> vector<8x128xf32>
    %c0_3 = arith.constant 0 : index
    %c0_4 = arith.constant 0 : index
    %3 = vector.load %arg3[%c0_3, %c0_4] : memref<1x128xf32, #tpu.memory_space<vmem>>, vector<1x128xf32>
    %4 = vector.broadcast %3 : vector<1x128xf32> to vector<8x128xf32>
    %5 = arith.addf %2, %4 : vector<8x128xf32>
    %6 = math.tanh %5 : vector<8x128xf32>
    %c0_5 = arith.constant 0 : index
    %c0_6 = arith.constant 0 : index
    %7 = vector.load %arg4[%c0_5, %c0_6] : memref<128x64xf32, #tpu.memory_space<vmem>>, vector<128x64xf32>
    %cst_7 = arith.constant dense<0.000000e+00> : vector<8x64xf32>
    %8 = tpu.matmul %6, %7, %cst_7 {dimension_numbers = #tpu.dot_dimension_numbers<[1], [0], [0], [1], [0, 0, 1, 1], [], []>} : vector<8x128xf32>, vector<128x64xf32>, vector<8x64xf32> -> vector<8x64xf32>
    %c0_8 = arith.constant 0 : index
    %c0_9 = arith.constant 0 : index
    %9 = vector.load %arg5[%c0_8, %c0_9] : memref<1x64xf32, #tpu.memory_space<vmem>>, vector<1x64xf32>
    %10 = vector.broadcast %9 : vector<1x64xf32> to vector<8x64xf32>
    %11 = arith.addf %8, %10 : vector<8x64xf32>
    %12 = math.tanh %11 : vector<8x64xf32>
    %c0_10 = arith.constant 0 : index
    %c0_11 = arith.constant 0 : index
    %13 = vector.load %arg6[%c0_10, %c0_11] : memref<64x128xf32, #tpu.memory_space<vmem>>, vector<64x128xf32>
    %cst_12 = arith.constant dense<0.000000e+00> : vector<8x128xf32>
    %14 = tpu.matmul %12, %13, %cst_12 {dimension_numbers = #tpu.dot_dimension_numbers<[1], [0], [0], [1], [0, 0, 1, 1], [], []>} : vector<8x64xf32>, vector<64x128xf32>, vector<8x128xf32> -> vector<8x128xf32>
    %c0_13 = arith.constant 0 : index
    %c0_14 = arith.constant 0 : index
    %15 = vector.load %arg7[%c0_13, %c0_14] : memref<1x128xf32, #tpu.memory_space<vmem>>, vector<1x128xf32>
    %16 = vector.broadcast %15 : vector<1x128xf32> to vector<8x128xf32>
    %17 = arith.addf %14, %16 : vector<8x128xf32>
    %18 = vector.extract_strided_slice %17 {offsets = [0, 0], sizes = [8, 6], strides = [1, 1]} : vector<8x128xf32> to vector<8x6xf32>
    %cst_15 = arith.constant dense<0xFF800000> : vector<8xf32>
    %19 = vector.multi_reduction <maximumf>, %18, %cst_15 [1] : vector<8x6xf32> to vector<8xf32>
    %20 = vector.shape_cast %19 : vector<8xf32> to vector<8x1xf32>
    %21 = vector.broadcast %20 : vector<8x1xf32> to vector<8x6xf32>
    %22 = arith.subf %18, %21 : vector<8x6xf32>
    %23 = math.exp %22 : vector<8x6xf32>
    %cst_16 = arith.constant dense<0.000000e+00> : vector<8xf32>
    %24 = vector.multi_reduction <add>, %23, %cst_16 [1] : vector<8x6xf32> to vector<8xf32>
    %25 = vector.shape_cast %24 : vector<8xf32> to vector<8x1xf32>
    %26 = vector.broadcast %25 : vector<8x1xf32> to vector<8x6xf32>
    %27 = arith.divf %23, %26 : vector<8x6xf32>
    %c0_17 = arith.constant 0 : index
    %c0_18 = arith.constant 0 : index
    %28 = vector.load %arg8[%c0_17, %c0_18] : memref<8x6xf32, #tpu.memory_space<vmem>>, vector<8x6xf32>
    tpu.vector_store %arg8[%c0_17, %c0_18], %27 {strides = array<i32>} : memref<8x6xf32, #tpu.memory_space<vmem>>, vector<8x6xf32>,
    return
  }
  func.func @transform_0(%arg0: i32) -> (i32, i32) {
    %c0_i32 = arith.constant 0 : i32
    %c0_i32_0 = arith.constant 0 : i32
    return %arg0, %c0_i32 : i32, i32
  }
  func.func @transform_1(%arg0: i32) -> (i32, i32) {
    %c0_i32 = arith.constant 0 : i32
    %c0_i32_0 = arith.constant 0 : i32
    %c0_i32_1 = arith.constant 0 : i32
    return %c0_i32, %c0_i32_0 : i32, i32
  }
  func.func @transform_2(%arg0: i32) -> (i32, i32) {
    %c0_i32 = arith.constant 0 : i32
    %c0_i32_0 = arith.constant 0 : i32
    %c0_i32_1 = arith.constant 0 : i32
    return %c0_i32, %c0_i32_0 : i32, i32
  }
  func.func @transform_3(%arg0: i32) -> (i32, i32) {
    %c0_i32 = arith.constant 0 : i32
    %c0_i32_0 = arith.constant 0 : i32
    %c0_i32_1 = arith.constant 0 : i32
    return %c0_i32, %c0_i32_0 : i32, i32
  }
  func.func @transform_4(%arg0: i32) -> (i32, i32) {
    %c0_i32 = arith.constant 0 : i32
    %c0_i32_0 = arith.constant 0 : i32
    %c0_i32_1 = arith.constant 0 : i32
    return %c0_i32, %c0_i32_0 : i32, i32
  }
  func.func @transform_5(%arg0: i32) -> (i32, i32) {
    %c0_i32 = arith.constant 0 : i32
    %c0_i32_0 = arith.constant 0 : i32
    %c0_i32_1 = arith.constant 0 : i32
    return %c0_i32, %c0_i32_0 : i32, i32
  }
  func.func @transform_6(%arg0: i32) -> (i32, i32) {
    %c0_i32 = arith.constant 0 : i32
    %c0_i32_0 = arith.constant 0 : i32
    %c0_i32_1 = arith.constant 0 : i32
    return %c0_i32, %c0_i32_0 : i32, i32
  }
  func.func @transform_7(%arg0: i32) -> (i32, i32) {
    %c0_i32 = arith.constant 0 : i32
    %c0_i32_0 = arith.constant 0 : i32
    return %arg0, %c0_i32 : i32, i32
  }
}

</mosaic_0001>

<bundles_post_ra>
// kernel: tpu_custom_call.1
= control target key start
LH: loop header
LB: loop body
LE: loop exit
PB: predicated region body
PF: predicated region fallthrough
CT: control target
= control target key end

     0   :  { %v492_v2 = vmov 0.0|0.0   ;;  %vm493_vm0 = vmmov 0   ;;  %v494_v4 = vmov 0.0   ;;  %vm37_vm1 = vcmask 130048   ;;  %s657_s0 = inlined_call_operand.vmem [shape: f32[8,16], index: 0, kind: input, shape index: {}]   ;;  %s658_s1 = inlined_call_operand.vmem [shape: f32[16,128], index: 1, kind: input, shape index: {}]   ;;  %s659_s2 = inlined_call_operand.vmem [shape: f32[1,128], index: 2, kind: input, shape index: {}]   ;;  %s660_s3 = inlined_call_operand.vmem [shape: f32[128,64], index: 3, kind: input, shape index: {}]   ;;  %s661_s4 = inlined_call_operand.vmem [shape: f32[1,64], index: 4, kind: input, shape index: {}]   ;;  %s662_s5 = inlined_call_operand.vmem [shape: f32[64,128], index: 5, kind: input, shape index: {}]   ;;  %s663_s6 = inlined_call_operand.vmem [shape: f32[1,128], index: 6, kind: input, shape index: {}]   ;;  %s664_s7 = inlined_call_operand.hbm [shape: f32[8,6], index: 7, kind: output, shape index: {}]  }
   0x1   :  { %v28_v0 = vld [vmem:[%s658_s1] sm:$0xff]  ;;  %v29_v1 = vld [vmem:[%s658_s1 + $0x8] sm:$0xff]  ;;  %417 = vmatprep.subr.bf16.mxu0 %v492_v2  ;;  %360 = vmatprep.mubr.msk.f32.mxu0 %vm493_vm0, %v494_v4  ;;  %v114_v7 = vld [vmem:[%s660_s3 + $0x10] sm:$0xff] }
   0x2   :  { %v418_v3 = vpack.c.bf16 %v29_v1, %v28_v0  ;;  %v112_v5 = vld [vmem:[%s660_s3] sm:$0xff]  ;;  %v113_v6 = vld [vmem:[%s660_s3 + $0x8] sm:$0xff]  ;;  %420 = vmatprep.subr.bf16.mxu1 %v492_v2  ;;  %v115_v9 = vld [vmem:[%s660_s3 + $0x18] sm:$0xff]  ;;  %395 = vmatprep.mubr.msk.f32.mxu1 %vm493_vm0, %v494_v4 }
   0x3   :  { %v421_v8 = vpack.c.bf16 %v113_v6, %v112_v5  ;;  %v27_v10 = vld [vmem:[%s657_s0] sm:$0xff]  ;;  %v424_v11 = vpack.c.bf16 %v115_v9, %v114_v7 }
   0x4   :  { %419 = vmatpush3.bf16.msra.mxu0 %v418_v3 }
   0x5   :  { %422 = vmatpush3.bf16.msra.mxu1 %v421_v8  ;;  %444 = vmatprep.subr.bf16.mxu0 %v492_v2 }
   0x6   :  { %12 = vsyncpa [#allocation3], 0  ;;  %423 = vmatprep.subr.bf16.mxu1 %v492_v2  ;;  %v116_v12 = vld [vmem:[%s660_s3 + $0x20] sm:$0xff]  ;;  %v117_v13 = vld [vmem:[%s660_s3 + $0x28] sm:$0xff]  ;;  %vm221_vm2 = vcmask 523264   ;;  %vm295_vm3 = vcmask 48128  }
   0x7   :  { %361 = vmatmul.mubr.msk.f32.vlgmr.msra.gmra.mrb[0].mxu0 %vm37_vm1, %v27_v10  ;;  %v427_v14 = vpack.c.bf16 %v117_v13, %v116_v12  ;;  %v118_v15 = vld [vmem:[%s660_s3 + $0x30] sm:$0xff]  ;;  %v119_v16 = vld [vmem:[%s660_s3 + $0x38] sm:$0xff]  ;;  %v120_v18 = vld [vmem:[%s660_s3 + $0x40] sm:$0xff] }
   0x8   :  { %414 = vmatprep.mubr.msk.f32.mxu0 %vm493_vm0, %v494_v4  ;;  %v430_v17 = vpack.c.bf16 %v119_v16, %v118_v15  ;;  %v121_v19 = vld [vmem:[%s660_s3 + $0x48] sm:$0xff]  ;;  %v122_v21 = vld [vmem:[%s660_s3 + $0x50] sm:$0xff]  ;;  %v123_v22 = vld [vmem:[%s660_s3 + $0x58] sm:$0xff] }
   0x9   :  { %425 = vmatpush3.bf16.msra.mxu1 %v424_v11  ;;  %v433_v20 = vpack.c.bf16 %v121_v19, %v120_v18  ;;  %v436_v23 = vpack.c.bf16 %v123_v22, %v122_v21  ;;  %v124_v24 = vld [vmem:[%s660_s3 + $0x60] sm:$0xff]  ;;  %v125_v25 = vld [vmem:[%s660_s3 + $0x68] sm:$0xff]  ;;  %v126_v27 = vld [vmem:[%s660_s3 + $0x70] sm:$0xff] }
   0xa   :  { %426 = vmatprep.subr.bf16.mxu1 %v492_v2  ;;  %v439_v26 = vpack.c.bf16 %v125_v25, %v124_v24  ;;  %v127_v28 = vld [vmem:[%s660_s3 + $0x78] sm:$0xff]  ;;  %v206_v30 = vld [vmem:[%s662_s5] sm:$0xff]  ;;  %v207_v31 = vld [vmem:[%s662_s5 + $0x8] sm:$0xff] }
   0xb   :  { %v442_v29 = vpack.c.bf16 %v127_v28, %v126_v27  ;;  %v445_v32 = vpack.c.bf16 %v207_v31, %v206_v30  ;;  %v322_v33 = vld [vmem:[%s659_s2] ss:$0 sm:$0xff]  ;;  %v208_v38 = vld [vmem:[%s662_s5 + $0x10] sm:$0xff]  ;;  %v209_v39 = vld [vmem:[%s662_s5 + $0x18] sm:$0xff] }
   0xc   :  { %v448_v40 = vpack.c.bf16 %v209_v39, %v208_v38  ;;  %v210_v41 = vld [vmem:[%s662_s5 + $0x20] sm:$0xff]  ;;  %v211_v42 = vld [vmem:[%s662_s5 + $0x28] sm:$0xff]  ;;  %v212_v44 = vld [vmem:[%s662_s5 + $0x30] sm:$0xff] }
   0xd   :  { %428 = vmatpush3.bf16.msra.mxu1 %v427_v14  ;;  %446 = vmatpush3.bf16.msra.mxu0 %v445_v32  ;;  %v451_v43 = vpack.c.bf16 %v211_v42, %v210_v41  ;;  %v213_v45 = vld [vmem:[%s662_s5 + $0x38] sm:$0xff]  ;;  %v324_v47 = vld [vmem:[%s661_s4] ss:$0 sm:$0xff]  ;;  %s495_s4 = smov [#allocation2]  }
   0xe   :  { %429 = vmatprep.subr.bf16.mxu1 %v492_v2  ;;  %447 = vmatprep.subr.bf16.mxu0 %v492_v2  ;;  %v454_v46 = vpack.c.bf16 %v213_v45, %v212_v44  ;;  %v325_v52 = vld [vmem:[%s663_s6] ss:$0 sm:$0xff]  ;;  %s314_s5 = sshll.u32 %s495_s4, 4  ;;  %s315_s5 = int_to_ptr.vmem [resolvable:$true] %s314_s5 }
   0xf   :  { %s468_s6 = scalar_lea.vmem %s315_s5, 128  ;;  %p473_p1 = scmp.lt.s32.totalorder %s315_s5, %s315_s5 }
  0x10   :  { %p469_p0 = scmp.ne.s32.totalorder %s315_s5, %s468_s6  ;;  %p474_p2 = scmp.lt.s32.totalorder %s468_s6, %s468_s6 }
  0x11   :  { %431 = vmatpush3.bf16.msra.mxu1 %v430_v17  ;;  %449 = vmatpush3.bf16.msra.mxu0 %v448_v40 }
  0x12   :  { %432 = vmatprep.subr.bf16.mxu1 %v492_v2  ;;  %450 = vmatprep.subr.bf16.mxu0 %v492_v2  ;;  %p475_p3 = por %p474_p2, %p473_p1 }
  0x14   :  { %p476_p4 = pnand %p475_p3, %p469_p0 }
  0x15   :  { %434 = vmatpush3.bf16.msra.mxu1 %v433_v20  ;;  %452 = vmatpush3.bf16.msra.mxu0 %v451_v43 }
  0x16   :  { %435 = vmatprep.subr.bf16.mxu1 %v492_v2  ;;  %453 = vmatprep.subr.bf16.mxu0 %v492_v2 }
  0x19   :  { %437 = vmatpush3.bf16.msra.mxu1 %v436_v23  ;;  %455 = vmatpush3.bf16.msra.mxu0 %v454_v46 }
  0x1a   :  { %438 = vmatprep.subr.bf16.mxu1 %v492_v2 }
  0x1d   :  { %440 = vmatpush3.bf16.msra.mxu1 %v439_v26 }
  0x1e   :  { %441 = vmatprep.subr.bf16.mxu1 %v492_v2 }
  0x21   :  { %443 = vmatpush3.bf16.msra.mxu1 %v442_v29 }
  0xda   :  { %v107_v34 = vpop.f32.mrb[0].mxu0 }
  0xdb   :  { %v108_v35 = vadd.f32 %v322_v33, %v107_v34  ;;  %v362_v36 = vpop.f32.mrb[1].mxu0 }
  0xdd   :  { %460 = vtanh.f32 %v108_v35 }
  0xe7   :  { %v461_v37 = vpop.eup %460 }
  0xe8   :  { %396 = vmatmul.mubr.f32.vlgmr.msra.gmra.mrb[0].mxu1 %v461_v37 }
 0x1bb   :  { %v201_v48 = vpop.f32.mrb[0].mxu1 }
 0x1bc   :  { %v202_v49 = vadd.f32 %v324_v47, %v201_v48  ;;  %v397_v50 = vpop.f32.mrb[1].mxu1 }
 0x1be   :  { %462 = vtanh.f32 %v202_v49 }
 0x1c8   :  { %v463_v51 = vpop.eup %462 }
 0x1c9   :  { %415 = vmatmul.mubr.msk.f32.vlgmr.msra.gmra.mrb[2].mxu0 %vm221_vm2, %v463_v51 }
 0x29c   :  { %v291_v53 = vpop.f32.mrb[2].mxu0 }
 0x29d   :  { %v292_v54 = vadd.f32 %v325_v52, %v291_v53  ;;  %v416_v55 = vpop.f32.mrb[3].mxu0 }
 0x29f   :  { %v296_v56 = vsel %vm295_vm3, %v292_v54, -inf }
 0x2a0   :  { %297 = vmax.xlane.f32.xlu0 %v296_v56 }
 0x32d   :  { %v298_v57 = vpop.xlane.xlu0 %297 }
 0x32e   :  { %v299_v58 = vsub.f32 %v292_v54, %v298_v57 }
 0x330   :  { %v300_v59 = vmul.f32 1.442695, %v299_v58 }
 0x332   :  { %464 = vpow2.f32 %v300_v59 }
 0x33c   :  { %v465_v60 = vpop.eup %464 }
 0x33d   :  { %v302_v61 = vsel %vm295_vm3, %v465_v60, 0.0 }
 0x33e   :  { %303 = vadd.xlane.f32.xlu0 %v302_v61 }
 0x3cb   :  { %v304_v62 = vpop.xlane.xlu0 %303 }
 0x3cc   :  { %466 = vrcp.f32 %v304_v62 }
 0x3d6   :  { %v467_v63 = vpop.eup %466 }
 0x3d7   :  { %v306_v0 = vmul.f32 %v467_v63, %v465_v60 }
 0x3d9   :  { %307 = vst.msk [vmem:[#allocation2] sm:$0xff] %vm295_vm3, %v306_v0 }
 0x3da   :  { %479 = shalt.err (!%p476_p4)
}
 0x3db   :  { %s480_s1 = scalar_lea.hbm %s664_s7, 128 }
 0x3dc   :  { %p481_p5 = scmp.ne.s32.totalorder %s664_s7, %s480_s1  ;;  %p484_p6 = scmp.lt.u32.totalorder %s480_s1, %s664_s7 }
 0x3de   :  { %p486_p7 = pnand %p484_p6, %p481_p5 }
 0x3e0   :  { %489 = shalt.err (!%p486_p7)
}
 0x3e1   :  { %317 = dma.vmem_to_hbm [thread:$0]  %s315_s5, 128, %s664_s7, [#allocation3]  }
 0x3e2   :  { %490 = dma.done.wait [#allocation3], 128  }
 0x3e3   :  { %491 = vsyncadd [#allocation3], 4294967168 }
 0x3e4   :  { %321 = vsyncpa [#allocation3], 1 }

</bundles_post_ra>
